<compile_context>
chip_gen: v5e
topology: v5e:2x2
jax: 0.10.0
libtpu: 0.0.40
codegen_flags: <defaults>
</compile_context>

<pallas_src>
import jax
import jax.numpy as jnp
from jax.experimental import pallas as pl
from jax.experimental.pallas import tpu as pltpu

SELU_SCALE = 1.0507009873554805
SELU_ALPHA = 1.6732632423543772
BN_EPS = 1e-5
BETA = 0.1


# ---------------------------------------------------------------------------
# in-kernel helpers (traced inside the Pallas kernel)
# ---------------------------------------------------------------------------
def _selu(x):
    return SELU_SCALE * (jnp.maximum(x, 0.0)
                         + jnp.minimum(0.0, SELU_ALPHA * (jnp.exp(x) - 1.0)))


def _soft_threshold(u, theta):
    # F.selu(u - theta) - F.selu(-u - theta)
    return _selu(u - theta) - _selu(-u - theta)


def _batchnorm_train(x, gamma, beta):
    # nn.BatchNorm1d, training mode: batch mean / biased variance.
    mean = jnp.mean(x, axis=0, keepdims=True)
    xc = x - mean
    var = jnp.mean(xc * xc, axis=0, keepdims=True)
    return xc * jax.lax.rsqrt(var + BN_EPS) * gamma + beta


def _mm(a, b):      # a @ b            (plain MXU contraction)
    return jax.lax.dot_general(a, b, (((1,), (0,)), ((), ())),
                               preferred_element_type=jnp.float32)


def _mm_tn(a, b):   # a.T @ b          (only used once: input.T @ view_cat)
    return jax.lax.dot_general(a, b, (((0,), (0,)), ((), ())),
                               preferred_element_type=jnp.float32)


def _mm_nt(a, b):   # a @ b.T          (only used with the in-kernel D)
    return jax.lax.dot_general(a, b, (((1,), (1,)), ((), ())),
                               preferred_element_type=jnp.float32)


# ---------------------------------------------------------------------------
# fused forward kernel (whole Net.forward for epoch % 10 != 0)
# ---------------------------------------------------------------------------
def _make_fused_kernel(n_view, n_classes, nfeats):
    c = n_classes
    sumf = int(sum(nfeats))
    nvc = n_view * c
    offs, o = [], 0
    for f in nfeats:
        offs.append(o)
        o += int(f)

    def kernel(s_ref, x_ref, w_ref, v_ref, oh_ref, out_ref):
        theta = s_ref[0]           # SMEM: [theta, w_0 .. w_{n_view-1}]

        x_cat = x_ref[...]         # (N, sumF)  concatenated views
        w = w_ref[...]             # weight slab
        v = v_ref[...]             # per-feature vector slab

        zz_wt = w[0:sumf, 0:c]                              # stacked zz_w.T   (sumF, C)
        m_wt = w[sumf:2 * sumf, 0:sumf]                     # block-diag M.T   (sumF, sumF)
        ru_w = w[2 * sumf:2 * sumf + 2 * nvc, 0:nvc]        # [blkdiag R.T ; blkdiag U.T]

        m_gamma = v[0:1, 0:sumf]
        m_beta = v[1:2, 0:sumf]
        m_bias = v[2:3, 0:sumf]
        r_gamma = v[3:4, 0:nvc]
        r_beta = v[4:5, 0:nvc]
        u_gamma = v[5:6, 0:nvc]
        u_beta = v[6:7, 0:nvc]
        ru_bias = v[7:8, 0:nvc]                             # r_b + u_b per view
        zz_bsum = v[8:9, 0:c]                               # sum_j zz_b_j

        # ---- ZZ_init: one matmul over the lane-concatenated views ----------
        output_z = (_mm(x_cat, zz_wt) + zz_bsum) * (1.0 / n_view)      # (N, C)

        # ---- all views' Block bodies, batched along lanes -------------------
        # D_j = M_j(M_norm_j(input.T @ view_j))  — M collapsed to block-diag.
        g_cat = _mm_tn(output_z, x_cat)                                # (C, sumF)
        gn_cat = _batchnorm_train(g_cat, m_gamma, m_beta)
        d_cat = _mm(gn_cat, m_wt) + m_bias                             # (C, sumF)

        # view_j - E_j_new == input @ D_j  (exact; E starts at zero)
        zd_pre = _mm(output_z, d_cat)                                  # (N, sumF)

        # (view - E) @ D.T per view (block-wise contraction), concat along lanes
        zd_list = []
        for j in range(n_view):
            f, off = nfeats[j], offs[j]
            zd_list.append(_mm_nt(zd_pre[:, off:off + f],
                                  d_cat[:, off:off + f]))              # (N, C)
        zd_cat = jnp.concatenate(zd_list, axis=1)                      # (N, nvC)
        un_cat = _batchnorm_train(zd_cat, u_gamma, u_beta)

        # R_norm(output_z): stats once, per-view affine via concatenated gamma/beta
        mean = jnp.mean(output_z, axis=0, keepdims=True)
        xc = output_z - mean
        var = jnp.mean(xc * xc, axis=0, keepdims=True)
        xhat = xc * jax.lax.rsqrt(var + BN_EPS)
        rn_cat = jnp.concatenate([xhat] * n_view, axis=1) * r_gamma + r_beta

        # all R + U linears as one block matmul
        z_pre = _mm(jnp.concatenate([rn_cat, un_cat], axis=1), ru_w) + ru_bias
        zt = _soft_threshold(z_pre, theta)                             # (N, nvC)

        # weighted fusion (weight == ones for epoch % 10 != 0)
        fused = None
        for j in range(n_view):
            contrib = s_ref[1 + j] * zt[:, j * c:(j + 1) * c]
            fused = contrib if fused is None else fused + contrib      # (N, C)

        # update_centers: centers start at zero -> beta * per-class mean(fused)
        centers = _mm(oh_ref[...], fused)                              # (C, C)

        out_ref[...] = jnp.concatenate([fused, centers], axis=0)       # (N+C, C)

    return kernel


# ---------------------------------------------------------------------------
# wrapper: pack params into a few slabs, single grid=() pallas_call
# ---------------------------------------------------------------------------
def _block_diag(mats):
    total = sum(m.shape[1] for m in mats)
    rows, off = [], 0
    for m in mats:
        rows.append(jnp.pad(m, ((0, 0), (off, total - off - m.shape[1]))))
        off += m.shape[1]
    return jnp.concatenate(rows, axis=0)


def net_forward(params, features, true_label, epoch, n_view, n_classes):
    n = features[0].shape[0]
    c = n_classes
    nfeats = tuple(int(x.shape[1]) for x in features)
    sumf = sum(nfeats)
    nvc = n_view * c
    maxw = max(sumf, nvc, c)

    # TODO(synk): epoch % 10 == 0 path (update_view_centers / caculate_weight)
    # mutates module buffers; for epoch % 10 != 0 self.weight stays ones(n_view, 1).
    weight = jnp.ones((n_view,), jnp.float32)
    scalars = jnp.concatenate(
        [params["theta"].reshape(-1), weight]).astype(jnp.float32)       # (1 + n_view,)

    x_cat = jnp.concatenate([x.astype(jnp.float32) for x in features], axis=1)

    blocks = params["blocks"]
    zz_wt = jnp.concatenate([w.T for w in params["zz_w"]], axis=0)        # (sumF, C)
    m_wt = _block_diag([bp["m_w"].T for bp in blocks])                    # (sumF, sumF)
    ru_w = jnp.concatenate([_block_diag([bp["r_w"].T for bp in blocks]),
                            _block_diag([bp["u_w"].T for bp in blocks])],
                           axis=0)                                        # (2*nvC, nvC)

    def padw(a):
        return jnp.pad(a, ((0, 0), (0, maxw - a.shape[1])))

    w_slab = jnp.concatenate([padw(zz_wt), padw(m_wt), padw(ru_w)], axis=0)

    def row(vec):
        vec = jnp.asarray(vec, jnp.float32).reshape(1, -1)
        return jnp.pad(vec, ((0, 0), (0, maxw - vec.shape[1])))

    def cat(key):
        return jnp.concatenate([bp[key] for bp in blocks])

    v_slab = jnp.concatenate([
        row(cat("m_gamma")), row(cat("m_beta")), row(cat("m_b")),
        row(cat("r_gamma")), row(cat("r_beta")),
        row(cat("u_gamma")), row(cat("u_beta")),
        row(jnp.concatenate([bp["r_b"] + bp["u_b"] for bp in blocks])),
        row(sum(params["zz_b"])),
    ], axis=0)                                                            # (9, maxW)

    # beta-scaled one-hot / count, already transposed to (C, N)
    labels = true_label.astype(jnp.int32)
    onehot_t = (labels[None, :] ==
                jnp.arange(c, dtype=jnp.int32)[:, None]).astype(jnp.float32)
    counts = jnp.sum(onehot_t, axis=1, keepdims=True)
    oh_scaled = onehot_t * (BETA / jnp.maximum(counts, 1.0))              # (C, N)

    flops = 2 * (n * sumf * c + c * n * sumf + c * sumf * sumf
                 + n * c * sumf + n * sumf * c + n * 2 * nvc * nvc + c * n * c)
    transcendentals = 2 * n * nvc
    bytes_accessed = 4 * (scalars.size + x_cat.size + w_slab.size
                          + v_slab.size + oh_scaled.size + (n + c) * c)

    out = pl.pallas_call(
        _make_fused_kernel(n_view, c, nfeats),
        out_shape=jax.ShapeDtypeStruct((n + c, c), jnp.float32),
        in_specs=[pl.BlockSpec(memory_space=pltpu.MemorySpace.SMEM)]
                 + [pl.BlockSpec(memory_space=pltpu.MemorySpace.VMEM)] * 4,
        out_specs=pl.BlockSpec(memory_space=pltpu.MemorySpace.VMEM),
        cost_estimate=pl.CostEstimate(flops=flops,
                                      transcendentals=transcendentals,
                                      bytes_accessed=bytes_accessed),
    )(scalars, x_cat, w_slab, v_slab, oh_scaled)

    return out[:n], out[n:]


# ---------------------------------------------------------------------------
# parameter init (matches PyTorch nn.Linear / nn.BatchNorm1d defaults)
# ---------------------------------------------------------------------------
def _linear_init(key, out_f, in_f):
    kw, kb = jax.random.split(key)
    bound = 1.0 / jnp.sqrt(jnp.float32(in_f))
    w = jax.random.uniform(kw, (out_f, in_f), jnp.float32, -bound, bound)
    b = jax.random.uniform(kb, (out_f,), jnp.float32, -bound, bound)
    return w, b


def init_params(key, nfeats, n_classes, para):
    keys = jax.random.split(key, 4 * len(nfeats) + 1)
    params = {"theta": jnp.array([para], jnp.float32),
              "theta2": jnp.array([para], jnp.float32),
              "zz_w": [], "zz_b": [], "blocks": []}
    ki = 0
    for feat in nfeats:
        w, b = _linear_init(keys[ki], n_classes, feat); ki += 1
        params["zz_w"].append(w)
        params["zz_b"].append(b)
    for feat in nfeats:
        mw, mb = _linear_init(keys[ki], feat, feat); ki += 1
        rw, rb = _linear_init(keys[ki], n_classes, n_classes); ki += 1
        uw, ub = _linear_init(keys[ki], n_classes, n_classes); ki += 1
        params["blocks"].append({
            "m_gamma": jnp.ones((feat,), jnp.float32),
            "m_beta": jnp.zeros((feat,), jnp.float32),
            "m_w": mw, "m_b": mb,
            "r_gamma": jnp.ones((n_classes,), jnp.float32),
            "r_beta": jnp.zeros((n_classes,), jnp.float32),
            "r_w": rw, "r_b": rb,
            "u_gamma": jnp.ones((n_classes,), jnp.float32),
            "u_beta": jnp.zeros((n_classes,), jnp.float32),
            "u_w": uw, "u_b": ub,
        })
    return params


# ---------------------------------------------------------------------------
if __name__ == "__main__":
    N = 16               # batch (samples)
    NFEATS = (32, 16)    # per-view feature dims
    N_VIEW = len(NFEATS)
    N_CLASSES = 8
    PARA = 0.5
    EPOCH = 1            # epoch % 10 != 0

    key = jax.random.PRNGKey(0)
    kp, kf0, kf1, kl = jax.random.split(key, 4)

    params = init_params(kp, NFEATS, N_CLASSES, PARA)
    features = [
        jax.random.normal(kf0, (N, NFEATS[0]), jnp.float32),
        jax.random.normal(kf1, (N, NFEATS[1]), jnp.float32),
    ]
    true_label = jax.random.randint(kl, (N,), 0, N_CLASSES)

    fwd = jax.jit(net_forward, static_argnums=(3, 4, 5))
    output_z, centers = fwd(params, features, true_label, EPOCH,
                            N_VIEW, N_CLASSES)
    jax.block_until_ready((output_z, centers))

    assert output_z.shape == (N, N_CLASSES)
    assert centers.shape == (N_CLASSES, N_CLASSES)
    print("KERNEL_OK")
</pallas_src>

<mosaic_0001>
module attributes {stable_mosaic.version = 11 : i64} {
  func.func @kernel(%arg0: memref<3xf32, #tpu.memory_space<smem>>, %arg1: memref<16x48xf32, #tpu.memory_space<vmem>>, %arg2: memref<128x48xf32, #tpu.memory_space<vmem>>, %arg3: memref<9x48xf32, #tpu.memory_space<vmem>>, %arg4: memref<8x16xf32, #tpu.memory_space<vmem>>, %arg5: memref<24x8xf32, #tpu.memory_space<vmem>>) attributes {dimension_semantics = [], scalar_prefetch = 0 : i64, scratch_operands = 0 : i64, tpu.core_type = #tpu.core_type<tc>} {
    %c0 = arith.constant 0 : index
    %0 = memref.load %arg0[%c0] : memref<3xf32, #tpu.memory_space<smem>>
    %c0_0 = arith.constant 0 : index
    %c0_1 = arith.constant 0 : index
    %1 = vector.load %arg1[%c0_0, %c0_1] : memref<16x48xf32, #tpu.memory_space<vmem>>, vector<16x48xf32>
    %c0_2 = arith.constant 0 : index
    %c0_3 = arith.constant 0 : index
    %2 = vector.load %arg2[%c0_2, %c0_3] : memref<128x48xf32, #tpu.memory_space<vmem>>, vector<128x48xf32>
    %c0_4 = arith.constant 0 : index
    %c0_5 = arith.constant 0 : index
    %3 = vector.load %arg3[%c0_4, %c0_5] : memref<9x48xf32, #tpu.memory_space<vmem>>, vector<9x48xf32>
    %4 = vector.extract_strided_slice %2 {offsets = [0, 0], sizes = [48, 8], strides = [1, 1]} : vector<128x48xf32> to vector<48x8xf32>
    %5 = vector.extract_strided_slice %2 {offsets = [48, 0], sizes = [48, 48], strides = [1, 1]} : vector<128x48xf32> to vector<48x48xf32>
    %6 = vector.extract_strided_slice %2 {offsets = [96, 0], sizes = [32, 16], strides = [1, 1]} : vector<128x48xf32> to vector<32x16xf32>
    %7 = vector.extract_strided_slice %3 {offsets = [0, 0], sizes = [1, 48], strides = [1, 1]} : vector<9x48xf32> to vector<1x48xf32>
    %8 = vector.extract_strided_slice %3 {offsets = [1, 0], sizes = [1, 48], strides = [1, 1]} : vector<9x48xf32> to vector<1x48xf32>
    %9 = vector.extract_strided_slice %3 {offsets = [2, 0], sizes = [1, 48], strides = [1, 1]} : vector<9x48xf32> to vector<1x48xf32>
    %10 = vector.extract_strided_slice %3 {offsets = [3, 0], sizes = [1, 16], strides = [1, 1]} : vector<9x48xf32> to vector<1x16xf32>
    %11 = vector.extract_strided_slice %3 {offsets = [4, 0], sizes = [1, 16], strides = [1, 1]} : vector<9x48xf32> to vector<1x16xf32>
    %12 = vector.extract_strided_slice %3 {offsets = [5, 0], sizes = [1, 16], strides = [1, 1]} : vector<9x48xf32> to vector<1x16xf32>
    %13 = vector.extract_strided_slice %3 {offsets = [6, 0], sizes = [1, 16], strides = [1, 1]} : vector<9x48xf32> to vector<1x16xf32>
    %14 = vector.extract_strided_slice %3 {offsets = [7, 0], sizes = [1, 16], strides = [1, 1]} : vector<9x48xf32> to vector<1x16xf32>
    %15 = vector.extract_strided_slice %3 {offsets = [8, 0], sizes = [1, 8], strides = [1, 1]} : vector<9x48xf32> to vector<1x8xf32>
    %cst = arith.constant dense<0.000000e+00> : vector<16x8xf32>
    %16 = tpu.matmul %1, %4, %cst {dimension_numbers = #tpu.dot_dimension_numbers<[1], [0], [0], [1], [0, 0, 1, 1], [], []>} : vector<16x48xf32>, vector<48x8xf32>, vector<16x8xf32> -> vector<16x8xf32>
    %17 = vector.broadcast %15 : vector<1x8xf32> to vector<16x8xf32>
    %18 = arith.addf %16, %17 : vector<16x8xf32>
    %cst_6 = arith.constant 5.000000e-01 : f32
    %19 = vector.broadcast %cst_6 : f32 to vector<16x8xf32>
    %20 = arith.mulf %18, %19 : vector<16x8xf32>
    %cst_7 = arith.constant dense<0.000000e+00> : vector<8x48xf32>
    %21 = tpu.matmul %20, %1, %cst_7 {dimension_numbers = #tpu.dot_dimension_numbers<[0], [0], [1], [1], [0, 1, 1, 1], [], []>} : vector<16x8xf32>, vector<16x48xf32>, vector<8x48xf32> -> vector<8x48xf32>
    %cst_8 = arith.constant dense<0.000000e+00> : vector<48xf32>
    %22 = vector.multi_reduction <add>, %21, %cst_8 [0] : vector<8x48xf32> to vector<48xf32>
    %23 = vector.shape_cast %22 : vector<48xf32> to vector<1x48xf32>
    %cst_9 = arith.constant 8.000000e+00 : f32
    %24 = vector.broadcast %cst_9 : f32 to vector<1x48xf32>
    %25 = arith.divf %23, %24 : vector<1x48xf32>
    %26 = vector.broadcast %25 : vector<1x48xf32> to vector<8x48xf32>
    %27 = arith.subf %21, %26 : vector<8x48xf32>
    %28 = arith.mulf %27, %27 : vector<8x48xf32>
    %cst_10 = arith.constant dense<0.000000e+00> : vector<48xf32>
    %29 = vector.multi_reduction <add>, %28, %cst_10 [0] : vector<8x48xf32> to vector<48xf32>
    %30 = vector.shape_cast %29 : vector<48xf32> to vector<1x48xf32>
    %cst_11 = arith.constant 8.000000e+00 : f32
    %31 = vector.broadcast %cst_11 : f32 to vector<1x48xf32>
    %32 = arith.divf %30, %31 : vector<1x48xf32>
    %cst_12 = arith.constant 9.99999974E-6 : f32
    %33 = vector.broadcast %cst_12 : f32 to vector<1x48xf32>
    %34 = arith.addf %32, %33 : vector<1x48xf32>
    %35 = math.rsqrt %34 : vector<1x48xf32>
    %36 = vector.broadcast %35 : vector<1x48xf32> to vector<8x48xf32>
    %37 = arith.mulf %27, %36 : vector<8x48xf32>
    %38 = vector.broadcast %7 : vector<1x48xf32> to vector<8x48xf32>
    %39 = arith.mulf %37, %38 : vector<8x48xf32>
    %40 = vector.broadcast %8 : vector<1x48xf32> to vector<8x48xf32>
    %41 = arith.addf %39, %40 : vector<8x48xf32>
    %cst_13 = arith.constant dense<0.000000e+00> : vector<8x48xf32>
    %42 = tpu.matmul %41, %5, %cst_13 {dimension_numbers = #tpu.dot_dimension_numbers<[1], [0], [0], [1], [0, 0, 1, 1], [], []>} : vector<8x48xf32>, vector<48x48xf32>, vector<8x48xf32> -> vector<8x48xf32>
    %43 = vector.broadcast %9 : vector<1x48xf32> to vector<8x48xf32>
    %44 = arith.addf %42, %43 : vector<8x48xf32>
    %cst_14 = arith.constant dense<0.000000e+00> : vector<16x48xf32>
    %45 = tpu.matmul %20, %44, %cst_14 {dimension_numbers = #tpu.dot_dimension_numbers<[1], [0], [0], [1], [0, 0, 1, 1], [], []>} : vector<16x8xf32>, vector<8x48xf32>, vector<16x48xf32> -> vector<16x48xf32>
    %46 = vector.extract_strided_slice %45 {offsets = [0, 0], sizes = [16, 32], strides = [1, 1]} : vector<16x48xf32> to vector<16x32xf32>
    %47 = vector.extract_strided_slice %44 {offsets = [0, 0], sizes = [8, 32], strides = [1, 1]} : vector<8x48xf32> to vector<8x32xf32>
    %cst_15 = arith.constant dense<0.000000e+00> : vector<16x8xf32>
    %48 = tpu.matmul %46, %47, %cst_15 {dimension_numbers = #tpu.dot_dimension_numbers<[1], [1], [0], [0], [0, 0, 1, 0], [], []>} : vector<16x32xf32>, vector<8x32xf32>, vector<16x8xf32> -> vector<16x8xf32>
    %49 = vector.extract_strided_slice %45 {offsets = [0, 32], sizes = [16, 16], strides = [1, 1]} : vector<16x48xf32> to vector<16x16xf32>
    %50 = vector.extract_strided_slice %44 {offsets = [0, 32], sizes = [8, 16], strides = [1, 1]} : vector<8x48xf32> to vector<8x16xf32>
    %cst_16 = arith.constant dense<0.000000e+00> : vector<16x8xf32>
    %51 = tpu.matmul %49, %50, %cst_16 {dimension_numbers = #tpu.dot_dimension_numbers<[1], [1], [0], [0], [0, 0, 1, 0], [], []>} : vector<16x16xf32>, vector<8x16xf32>, vector<16x8xf32> -> vector<16x8xf32>
    %52 = tpu.concatenate %48, %51 in 1 : vector<16x8xf32>, vector<16x8xf32> -> vector<16x16xf32>
    %cst_17 = arith.constant dense<0.000000e+00> : vector<16xf32>
    %53 = vector.multi_reduction <add>, %52, %cst_17 [0] : vector<16x16xf32> to vector<16xf32>
    %54 = vector.shape_cast %53 : vector<16xf32> to vector<1x16xf32>
    %cst_18 = arith.constant 1.600000e+01 : f32
    %55 = vector.broadcast %cst_18 : f32 to vector<1x16xf32>
    %56 = arith.divf %54, %55 : vector<1x16xf32>
    %57 = vector.broadcast %56 : vector<1x16xf32> to vector<16x16xf32>
    %58 = arith.subf %52, %57 : vector<16x16xf32>
    %59 = arith.mulf %58, %58 : vector<16x16xf32>
    %cst_19 = arith.constant dense<0.000000e+00> : vector<16xf32>
    %60 = vector.multi_reduction <add>, %59, %cst_19 [0] : vector<16x16xf32> to vector<16xf32>
    %61 = vector.shape_cast %60 : vector<16xf32> to vector<1x16xf32>
    %cst_20 = arith.constant 1.600000e+01 : f32
    %62 = vector.broadcast %cst_20 : f32 to vector<1x16xf32>
    %63 = arith.divf %61, %62 : vector<1x16xf32>
    %cst_21 = arith.constant 9.99999974E-6 : f32
    %64 = vector.broadcast %cst_21 : f32 to vector<1x16xf32>
    %65 = arith.addf %63, %64 : vector<1x16xf32>
    %66 = math.rsqrt %65 : vector<1x16xf32>
    %67 = vector.broadcast %66 : vector<1x16xf32> to vector<16x16xf32>
    %68 = arith.mulf %58, %67 : vector<16x16xf32>
    %69 = vector.broadcast %12 : vector<1x16xf32> to vector<16x16xf32>
    %70 = arith.mulf %68, %69 : vector<16x16xf32>
    %71 = vector.broadcast %13 : vector<1x16xf32> to vector<16x16xf32>
    %72 = arith.addf %70, %71 : vector<16x16xf32>
    %cst_22 = arith.constant dense<0.000000e+00> : vector<8xf32>
    %73 = vector.multi_reduction <add>, %20, %cst_22 [0] : vector<16x8xf32> to vector<8xf32>
    %74 = vector.shape_cast %73 : vector<8xf32> to vector<1x8xf32>
    %cst_23 = arith.constant 1.600000e+01 : f32
    %75 = vector.broadcast %cst_23 : f32 to vector<1x8xf32>
    %76 = arith.divf %74, %75 : vector<1x8xf32>
    %77 = vector.broadcast %76 : vector<1x8xf32> to vector<16x8xf32>
    %78 = arith.subf %20, %77 : vector<16x8xf32>
    %79 = arith.mulf %78, %78 : vector<16x8xf32>
    %cst_24 = arith.constant dense<0.000000e+00> : vector<8xf32>
    %80 = vector.multi_reduction <add>, %79, %cst_24 [0] : vector<16x8xf32> to vector<8xf32>
    %81 = vector.shape_cast %80 : vector<8xf32> to vector<1x8xf32>
    %cst_25 = arith.constant 1.600000e+01 : f32
    %82 = vector.broadcast %cst_25 : f32 to vector<1x8xf32>
    %83 = arith.divf %81, %82 : vector<1x8xf32>
    %cst_26 = arith.constant 9.99999974E-6 : f32
    %84 = vector.broadcast %cst_26 : f32 to vector<1x8xf32>
    %85 = arith.addf %83, %84 : vector<1x8xf32>
    %86 = math.rsqrt %85 : vector<1x8xf32>
    %87 = vector.broadcast %86 : vector<1x8xf32> to vector<16x8xf32>
    %88 = arith.mulf %78, %87 : vector<16x8xf32>
    %89 = tpu.concatenate %88, %88 in 1 : vector<16x8xf32>, vector<16x8xf32> -> vector<16x16xf32>
    %90 = vector.broadcast %10 : vector<1x16xf32> to vector<16x16xf32>
    %91 = arith.mulf %89, %90 : vector<16x16xf32>
    %92 = vector.broadcast %11 : vector<1x16xf32> to vector<16x16xf32>
    %93 = arith.addf %91, %92 : vector<16x16xf32>
    %94 = tpu.concatenate %93, %72 in 1 : vector<16x16xf32>, vector<16x16xf32> -> vector<16x32xf32>
    %cst_27 = arith.constant dense<0.000000e+00> : vector<16x16xf32>
    %95 = tpu.matmul %94, %6, %cst_27 {dimension_numbers = #tpu.dot_dimension_numbers<[1], [0], [0], [1], [0, 0, 1, 1], [], []>} : vector<16x32xf32>, vector<32x16xf32>, vector<16x16xf32> -> vector<16x16xf32>
    %96 = vector.broadcast %14 : vector<1x16xf32> to vector<16x16xf32>
    %97 = arith.addf %95, %96 : vector<16x16xf32>
    %98 = vector.broadcast %0 : f32 to vector<16x16xf32>
    %99 = arith.subf %97, %98 : vector<16x16xf32>
    %cst_28 = arith.constant 0.000000e+00 : f32
    %100 = vector.broadcast %cst_28 : f32 to vector<16x16xf32>
    %101 = arith.maximumf %99, %100 : vector<16x16xf32>
    %102 = math.exp %99 : vector<16x16xf32>
    %cst_29 = arith.constant 1.000000e+00 : f32
    %103 = vector.broadcast %cst_29 : f32 to vector<16x16xf32>
    %104 = arith.subf %102, %103 : vector<16x16xf32>
    %cst_30 = arith.constant 1.67326319 : f32
    %105 = vector.broadcast %cst_30 : f32 to vector<16x16xf32>
    %106 = arith.mulf %105, %104 : vector<16x16xf32>
    %cst_31 = arith.constant 0.000000e+00 : f32
    %107 = vector.broadcast %cst_31 : f32 to vector<16x16xf32>
    %108 = arith.minimumf %107, %106 : vector<16x16xf32>
    %109 = arith.addf %101, %108 : vector<16x16xf32>
    %cst_32 = arith.constant 1.05070102 : f32
    %110 = vector.broadcast %cst_32 : f32 to vector<16x16xf32>
    %111 = arith.mulf %110, %109 : vector<16x16xf32>
    %cst_33 = arith.constant 0.000000e+00 : f32
    %112 = vector.broadcast %cst_33 : f32 to vector<16x16xf32>
    %113 = arith.subf %112, %97 : vector<16x16xf32>
    %114 = vector.broadcast %0 : f32 to vector<16x16xf32>
    %115 = arith.subf %113, %114 : vector<16x16xf32>
    %cst_34 = arith.constant 0.000000e+00 : f32
    %116 = vector.broadcast %cst_34 : f32 to vector<16x16xf32>
    %117 = arith.maximumf %115, %116 : vector<16x16xf32>
    %118 = math.exp %115 : vector<16x16xf32>
    %cst_35 = arith.constant 1.000000e+00 : f32
    %119 = vector.broadcast %cst_35 : f32 to vector<16x16xf32>
    %120 = arith.subf %118, %119 : vector<16x16xf32>
    %cst_36 = arith.constant 1.67326319 : f32
    %121 = vector.broadcast %cst_36 : f32 to vector<16x16xf32>
    %122 = arith.mulf %121, %120 : vector<16x16xf32>
    %cst_37 = arith.constant 0.000000e+00 : f32
    %123 = vector.broadcast %cst_37 : f32 to vector<16x16xf32>
    %124 = arith.minimumf %123, %122 : vector<16x16xf32>
    %125 = arith.addf %117, %124 : vector<16x16xf32>
    %cst_38 = arith.constant 1.05070102 : f32
    %126 = vector.broadcast %cst_38 : f32 to vector<16x16xf32>
    %127 = arith.mulf %126, %125 : vector<16x16xf32>
    %128 = arith.subf %111, %127 : vector<16x16xf32>
    %c1 = arith.constant 1 : index
    %129 = memref.load %arg0[%c1] : memref<3xf32, #tpu.memory_space<smem>>
    %130 = vector.extract_strided_slice %128 {offsets = [0, 0], sizes = [16, 8], strides = [1, 1]} : vector<16x16xf32> to vector<16x8xf32>
    %131 = vector.broadcast %129 : f32 to vector<16x8xf32>
    %132 = arith.mulf %131, %130 : vector<16x8xf32>
    %c2 = arith.constant 2 : index
    %133 = memref.load %arg0[%c2] : memref<3xf32, #tpu.memory_space<smem>>
    %134 = vector.extract_strided_slice %128 {offsets = [0, 8], sizes = [16, 8], strides = [1, 1]} : vector<16x16xf32> to vector<16x8xf32>
    %135 = vector.broadcast %133 : f32 to vector<16x8xf32>
    %136 = arith.mulf %135, %134 : vector<16x8xf32>
    %137 = arith.addf %132, %136 : vector<16x8xf32>
    %c0_39 = arith.constant 0 : index
    %c0_40 = arith.constant 0 : index
    %138 = vector.load %arg4[%c0_39, %c0_40] : memref<8x16xf32, #tpu.memory_space<vmem>>, vector<8x16xf32>
    %cst_41 = arith.constant dense<0.000000e+00> : vector<8x8xf32>
    %139 = tpu.matmul %138, %137, %cst_41 {dimension_numbers = #tpu.dot_dimension_numbers<[1], [0], [0], [1], [0, 0, 1, 1], [], []>} : vector<8x16xf32>, vector<16x8xf32>, vector<8x8xf32> -> vector<8x8xf32>
    %140 = tpu.concatenate %137, %139 in 0 : vector<16x8xf32>, vector<8x8xf32> -> vector<24x8xf32>
    %c0_42 = arith.constant 0 : index
    %c0_43 = arith.constant 0 : index
    %141 = vector.load %arg5[%c0_42, %c0_43] : memref<24x8xf32, #tpu.memory_space<vmem>>, vector<24x8xf32>
    tpu.vector_store %arg5[%c0_42, %c0_43], %140 {strides = array<i32>} : memref<24x8xf32, #tpu.memory_space<vmem>>, vector<24x8xf32>,
    return
  }
}

</mosaic_0001>

<bundles_post_ra>
// kernel: net_forward.1
= control target key start
LH: loop header
LB: loop body
LE: loop exit
PB: predicated region body
PF: predicated region fallthrough
CT: control target
= control target key end

     0   :  { %10 = vsyncpa [#allocation3], 0  ;;  %s612_s21 = smov [#allocation2]   ;;  %s797_s0 = inlined_call_operand.vmem [shape: f32[3], index: 0, kind: input, shape index: {}]   ;;  %s798_s1 = inlined_call_operand.vmem [shape: f32[16,48], index: 1, kind: input, shape index: {}]   ;;  %s799_s2 = inlined_call_operand.vmem [shape: f32[128,48], index: 2, kind: input, shape index: {}]   ;;  %s800_s3 = inlined_call_operand.vmem [shape: f32[9,48], index: 3, kind: input, shape index: {}]   ;;  %s801_s4 = inlined_call_operand.vmem [shape: f32[8,16], index: 4, kind: input, shape index: {}]   ;;  %s802_s5 = inlined_call_operand.vmem [shape: f32[24,8], index: 5, kind: output, shape index: {}]  }
   0x1   :  { %s16_s20 = sshll.u32 %s797_s0, 4  ;;  %s17_s20 = int_to_ptr.vmem [resolvable:$true] %s16_s20 }
   0x2   :  { %19 = dma.vmem_to_smem %s17_s20, 16, %s612_s21, [#allocation3]  }
   0x3   :  { %610 = dma.done.wait [#allocation3], 16  }
   0x4   :  { %611 = vsyncadd [#allocation3], 4294967280 }
   0x5   :  { %32 = sfence }
   0x6   :  { %v41_v0 = vld [vmem:[%s799_s2 + $0x28] sm:$0xff]  ;;  %v40_v1 = vld [vmem:[%s799_s2 + $0x20] sm:$0xff]  ;;  %v39_v2 = vld [vmem:[%s799_s2 + $0x18] sm:$0xff]  ;;  %vm55_vm0 = vcmask 392192   ;;  %vm119_vm1 = vcmask 130048   ;;  %v613_v16 = vmov 8.0  }
   0x7   :  { %72 = vmatpush.msra.mxu0 %v41_v0  ;;  %v35_v3 = vld [vmem:[%s798_s1 + $0x8] sm:$0xff]  ;;  %v38_v4 = vld [vmem:[%s799_s2 + $0x10] sm:$0xff]  ;;  %v34_v5 = vld [vmem:[%s798_s1] sm:$0xff]  ;;  %580 = vrcp.f32 %v613_v16  ;;  %vm238_vm6 = vcmask 261120   ;;  %vm208_vm7 = vcmask 64512   ;;  %s616_s27 = smov 8  }
   0x8   :  { %137 = vmatpush.msra.mxu1 %v35_v3  ;;  %v37_v6 = vld [vmem:[%s799_s2 + $0x8] sm:$0xff]  ;;  %v36_v7 = vld [vmem:[%s799_s2] sm:$0xff]  ;;  %v47_v33 = vld [vmem:[%s799_s2 + $0x58] sm:$0xff]  ;;  %s617_s8 = smov 16   ;;  %s569_s11 = sld [smem:[#allocation2 + $0x2]] }
   0x9   :  { %73 = vmatpush.msra.mxu0 %v40_v1  ;;  %v579_v8 = vld [vmem:[%s800_s3 + $0x8] ss:$0 sm:$0xff]  ;;  %198 = vmatpush.msra.mxu2 %v47_v33  ;;  %v46_v35 = vld [vmem:[%s799_s2 + $0x50] sm:$0xff]  ;;  %v44_v40 = vld [vmem:[%s799_s2 + $0x40] sm:$0xff]  ;;  %s618_s12 = smov 120   ;;  %s568_s1 = sld [smem:[#allocation2 + $0x1]] }
   0xa   :  { %138 = vmatpush.msra.mxu1 %v34_v5  ;;  %v45_v38 = vld [vmem:[%s799_s2 + $0x48] sm:$0xff]  ;;  %v43_v42 = vld [vmem:[%s799_s2 + $0x38] sm:$0xff]  ;;  %v42_v43 = vld [vmem:[%s799_s2 + $0x30] sm:$0xff] }
   0xb   :  { %74 = vmatpush.msra.mxu0 %v39_v2  ;;  %199 = vmatpush.msra.mxu2 %v46_v35  ;;  %v711_v53 = vld [vmem:[%s800_s3] sm:$0xff]  ;;  %s614_s3 = smov 96  }
   0xc   :  { %v180_v56 = vperm.slane %v711_v53, 0  ;;  %v182_v59 = vperm.slane %v711_v53, 1  ;;  %v184_v62 = vperm.slane %v711_v53, 2 }
   0xd   :  { %75 = vmatpush.msra.mxu0 %v38_v4  ;;  %v581_v17 = vpop.eup %580  ;;  %200 = vmatpush.msra.mxu2 %v45_v38  ;;  %v615_v4 = vmov 16.0  }
   0xe   :  { %v151_v18 = vmul.f32 8.0, %v581_v17  ;;  %vm155_vm2 = vweird.f32 %v581_v17 }
   0xf   :  { %76 = vmatpush.msra.mxu0 %v37_v6  ;;  %201 = vmatpush.msra.mxu2 %v44_v40 }
  0x10   :  { %v152_v19 = vsub.f32 1.0, %v151_v18 }
  0x11   :  { %77 = vmatpush.msra.mxu0 %v36_v7  ;;  %202 = vmatpush.msra.mxu2 %v43_v42 }
  0x12   :  { %550 = vmatmul.msk.f32.vlgmr.msra.gmra.mxu0 %vm55_vm0, %v34_v5  ;;  %v153_v23 = vmul.f32 %v581_v17, %v152_v19 }
  0x13   :  { %203 = vmatpush.msra.mxu2 %v42_v43 }
  0x14   :  { %v154_v26 = vadd.f32 %v581_v17, %v153_v23 }
  0x16   :  { %v156_v29 = vsel %vm155_vm2, %v581_v17, %v154_v26 }
  0x1a   :  { %551 = vmatmul.msk.f32.gmra.mxu0 %vm55_vm0, %v35_v3 }
  0x8f   :  { %v79_v9 = vpop.f32.mrf.mxu0 }
  0x90   :  { %v80_v10 = vadd.f32 %v579_v8, %v79_v9 }
  0x92   :  { %v681_v11 = vmul.f32 0.5, %v80_v10 }
  0x94   :  { %87 = vxpose.xlu0.b32.start [1/2] (short) (narrow) %v681_v11, 8  ;;  %v366_v2 = vsel %vm208_vm7, %v681_v11, 0.0 }
  0x97   :  { %v82_v12 = vpop.f32.mrf.mxu0 }
  0x98   :  { %v83_v13 = vadd.f32 %v579_v8, %v82_v12 }
  0x9a   :  { %v684_v14 = vmul.f32 0.5, %v83_v13 }
  0x9c   :  { %88 = vxpose.xlu0.b32.end [2/2] (short) (narrow) %v684_v14, 8  ;;  %v367_v1 = vsel %vm208_vm7, %v684_v14, 0.0 }
  0x9d   :  { %v368_v3 = vadd.f32 %v367_v1, %v366_v2 }
  0x9f   :  { %v369_v5 = vrot.slane %v368_v3, 4 }
  0xa1   :  { %v370_v7 = vadd.f32 %v369_v5, %v368_v3 }
  0xa3   :  { %v371_v9 = vrot.slane %v370_v7, 2 }
  0xa5   :  { %v372_v12 = vadd.f32 %v371_v9, %v370_v7 }
 0x138   :  { %v103_v15 = vpop.trf.xlu0 }
 0x139   :  { %552 = vmatmul.msk.f32.vlgmr.msra.gmra.mxu1 %vm119_vm1, %v103_v15  ;;  %v373_v15 = vrot.slane %v372_v12, 1 }
 0x13b   :  { %v374_v17 = vadd.f32 %v373_v15, %v372_v12 }
 0x1b6   :  { %v140_v20 = vpop.f32.mrf.mxu1 }
 0x1b7   :  { %v143_v21 = vsel %vm55_vm0, %v140_v20, 0.0 }
 0x1b8   :  { %v144_v22 = vrot.slane %v143_v21, 4 }
 0x1ba   :  { %v145_v24 = vadd.f32 %v144_v22, %v143_v21 }
 0x1bc   :  { %v146_v25 = vrot.slane %v145_v24, 2 }
 0x1be   :  { %v147_v27 = vadd.f32 %v146_v25, %v145_v24 }
 0x1c0   :  { %v148_v28 = vrot.slane %v147_v27, 1 }
 0x1c2   :  { %v149_v30 = vadd.f32 %v148_v28, %v147_v27 }
 0x1c4   :  { %v157_v31 = vmul.f32 %v156_v29, %v149_v30 }
 0x1c6   :  { %v158_v32 = vsub.f32 %v140_v20, %v157_v31 }
 0x1c8   :  { %v159_v34 = vmul.f32 %v158_v32, %v158_v32 }
 0x1ca   :  { %v160_v36 = vsel %vm55_vm0, %v159_v34, 0.0 }
 0x1cb   :  { %v161_v37 = vrot.slane %v160_v36, 4 }
 0x1cd   :  { %v162_v39 = vadd.f32 %v161_v37, %v160_v36 }
 0x1cf   :  { %v163_v41 = vrot.slane %v162_v39, 2 }
 0x1d1   :  { %v164_v44 = vadd.f32 %v163_v41, %v162_v39 }
 0x1d3   :  { %v165_v45 = vrot.slane %v164_v44, 1 }
 0x1d5   :  { %v166_v46 = vadd.f32 %v165_v45, %v164_v44 }
 0x1d7   :  { %v167_v47 = vmul.f32 %v166_v46, %v156_v29 }
 0x1d9   :  { %v168_v48 = vadd.f32 1e-05, %v167_v47 }
 0x1db   :  { %582 = vrsqrt.f32 %v168_v48  ;;  %vm175_vm4 = vweird.f32 %v168_v48 }
 0x1dc   :  { %584 = vrcp.f32 %v615_v4 }
 0x1e1   :  { %v583_v49 = vpop.eup %582 }
 0x1e2   :  { %v170_v50 = vmul.f32 %v583_v49, %v168_v48  ;;  %vm176_vm3 = vweird.f32 %v583_v49  ;;  %v585_v6 = vpop.eup %584 }
 0x1e3   :  { %vm177_vm5 = vmor %vm175_vm4, %vm176_vm3  ;;  %v326_v8 = vmul.f32 16.0, %v585_v6  ;;  %vm330_vm8 = vweird.f32 %v585_v6 }
 0x1e4   :  { %v171_v51 = vmul.f32 %v583_v49, %v170_v50 }
 0x1e5   :  { %v327_v10 = vsub.f32 1.0, %v326_v8 }
 0x1e6   :  { %v172_v52 = vmul.f32 0.5, %v171_v51 }
 0x1e7   :  { %v328_v13 = vmul.f32 %v585_v6, %v327_v10 }
 0x1e8   :  { %v173_v54 = vsub.f32 1.5, %v172_v52 }
 0x1e9   :  { %v329_v16 = vadd.f32 %v585_v6, %v328_v13 }
 0x1ea   :  { %v174_v55 = vmul.f32 %v583_v49, %v173_v54 }
 0x1eb   :  { %v727_v18 = vsel %vm330_vm8, %v585_v6, %v329_v16 }
 0x1ec   :  { %v178_v57 = vsel %vm177_vm5, %v583_v49, %v174_v55  ;;  %v375_v19 = vmul.f32 %v374_v17, %v727_v18 }
 0x1ed   :  { %v179_v58 = vmul.f32 %v178_v57, %v158_v32 }
 0x1ee   :  { %v376_v20 = vsub.f32 %v681_v11, %v375_v19  ;;  %v377_v21 = vsub.f32 %v684_v14, %v375_v19 }
 0x1ef   :  { %v181_v60 = vmul.f32 %v180_v56, %v179_v58 }
 0x1f0   :  { %v378_v22 = vmul.f32 %v376_v20, %v376_v20  ;;  %v379_v23 = vmul.f32 %v377_v21, %v377_v21 }
 0x1f1   :  { %v183_v61 = vadd.f32 %v182_v59, %v181_v60 }
 0x1f2   :  { %v380_v24 = vsel %vm208_vm7, %v378_v22, 0.0  ;;  %v381_v25 = vsel %vm208_vm7, %v379_v23, 0.0  ;;  %v49_v22 = vld [vmem:[%s799_s2 + $0x68] sm:$0xff] }
 0x1f3   :  { %553 = vmatmul.msk.f32.vlgmr.msra.gmra.mxu2 %vm55_vm0, %v183_v61  ;;  %v382_v26 = vadd.f32 %v381_v25, %v380_v24 }
 0x1f5   :  { %v383_v27 = vrot.slane %v382_v26, 4 }
 0x1f7   :  { %v384_v28 = vadd.f32 %v383_v27, %v382_v26 }
 0x1f9   :  { %v385_v29 = vrot.slane %v384_v28, 2 }
 0x1fb   :  { %v386_v30 = vadd.f32 %v385_v29, %v384_v28  ;;  %v360_v28 = vperm.slane %v711_v53, 5 }
 0x1fd   :  { %v387_v31 = vrot.slane %v386_v30, 1 }
 0x1ff   :  { %v388_v32 = vadd.f32 %v387_v31, %v386_v30  ;;  %v363_v31 = vperm.slane %v711_v53, 6 }
 0x201   :  { %v389_v33 = vmul.f32 %v388_v32, %v727_v18 }
 0x203   :  { %v390_v34 = vadd.f32 1e-05, %v389_v33 }
 0x205   :  { %586 = vrsqrt.f32 %v390_v34  ;;  %vm397_vm10 = vweird.f32 %v390_v34 }
 0x276   :  { %v205_v63 = vpop.f32.mrf.mxu2 }
 0x277   :  { %v206_v0 = vadd.f32 %v205_v63, %v184_v62 }
 0x279   :  { %275 = vrot.lane.b32.xlu1 %v206_v0, %s614_s3  ;;  %230 = vmatpush.msra.mxu3 %v206_v0 }
 0x27a   :  { %556 = vmatpush.xpose.msk.msrb.mxu1 %vm238_vm6, %v206_v0  ;;  %554 = vmatmul.msk.f32.vlgmr.msra.gmra.mxu3 %vm208_vm7, %v681_v11  ;;  %v587_v11 = vpop.eup %586 }
 0x27b   :  { %vm398_vm9 = vweird.f32 %v587_v11 }
 0x27c   :  { %vm399_vm11 = vmor %vm397_vm10, %vm398_vm9 }
 0x282   :  { %555 = vmatmul.msk.f32.gmra.mxu3 %vm208_vm7, %v684_v14  ;;  %v392_v14 = vmul.f32 %v587_v11, %v390_v34 }
 0x284   :  { %v393_v36 = vmul.f32 %v587_v11, %v392_v14  ;;  %v48_v14 = vld [vmem:[%s799_s2 + $0x60] sm:$0xff] }
 0x286   :  { %v394_v37 = vmul.f32 0.5, %v393_v36 }
 0x288   :  { %v395_v38 = vsub.f32 1.5, %v394_v37  ;;  %v413_v37 = vperm.slane %v711_v53, 3 }
 0x28a   :  { %v396_v40 = vmul.f32 %v587_v11, %v395_v38 }
 0x28c   :  { %v400_v41 = vsel %vm399_vm11, %v587_v11, %v396_v40 }
 0x28d   :  { %v738_v43 = vmul.f32 %v400_v41, %v376_v20  ;;  %v743_v44 = vmul.f32 %v400_v41, %v377_v21  ;;  %v51_v20 = vld [vmem:[%s799_s2 + $0x78] sm:$0xff]  ;;  %v50_v21 = vld [vmem:[%s799_s2 + $0x70] sm:$0xff]  ;;  %s33_s2 = sld [smem:[#allocation2]] }
 0x28e   :  { %448 = vmatpush.msrb.mxu2 %v51_v20 }
 0x290   :  { %449 = vmatpush.msrb.mxu2 %v50_v21 }
 0x292   :  { %450 = vmatpush.msrb.mxu2 %v49_v22 }
 0x294   :  { %451 = vmatpush.msrb.mxu2 %v48_v14  ;;  %v501_v14 = vstv %s568_s1 }
 0x2eb   :  { %v276_v35 = vpop.permute.xlu1 %275 }
 0x2ec   :  { %559 = vmatpush.xpose.msk.msrb.mxu3 %vm119_vm1, %v276_v35 }
 0x2fd   :  { %v232_v39 = vpop.f32.mrf.mxu3 }
 0x2fe   :  { %271 = vrot.lane.b32.xlu1 %v232_v39, %s614_s3  ;;  %557 = vmatmul.msk.f32.vlgmr.msrb.gmra.mxu1 %vm238_vm6, %v232_v39  ;;  %v416_v39 = vperm.slane %v711_v53, 4 }
 0x305   :  { %v235_v42 = vpop.f32.mrf.mxu3 }
 0x306   :  { %273 = vrot.lane.b32.xlu2 %v235_v42, %s614_s3  ;;  %558 = vmatmul.msk.f32.gmra.mxu1 %vm238_vm6, %v235_v42 }
 0x307   :  { %405 = vrot.lane.b32.xlu1 %v738_v43, %s616_s27 }
 0x30f   :  { %407 = vrot.lane.b32.xlu1 %v743_v44, %s616_s27 }
 0x360   :  { %v274_v46 = vpop.permute.xlu2 %273 }
 0x370   :  { %v272_v45 = vpop.permute.xlu1 %271 }
 0x371   :  { %560 = vmatmul.msk.f32.vlgmr.msrb.gmra.mxu3 %vm119_vm1, %v272_v45 }
 0x379   :  { %561 = vmatmul.msk.f32.gmra.mxu3 %vm119_vm1, %v274_v46  ;;  %v406_v36 = vpop.permute.xlu1 %405 }
 0x37a   :  { %v411_v38 = vsel %vm208_vm7, %v738_v43, %v406_v36  ;;  %v429_v43 = vperm.slane %v711_v53, 7 }
 0x37b   :  { %v265_v49 = vpop.f32.mrf.mxu1  ;;  %v414_v40 = vmul.f32 %v413_v37, %v411_v38 }
 0x37d   :  { %v417_v42 = vadd.f32 %v416_v39, %v414_v40 }
 0x381   :  { %v408_v41 = vpop.permute.xlu1 %407 }
 0x382   :  { %v412_v45 = vsel %vm208_vm7, %v743_v44, %v408_v41 }
 0x383   :  { %v268_v52 = vpop.f32.mrf.mxu1 }
 0x3f4   :  { %v300_v47 = vpop.f32.mrf.mxu3 }
 0x3f5   :  { %308 = vrot.lane.b32.xlu2 %v300_v47, %s616_s27 }
 0x3fc   :  { %v303_v48 = vpop.f32.mrf.mxu3 }
 0x3fd   :  { %310 = vrot.lane.b32.xlu0 %v303_v48, %s616_s27  ;;  %v415_v48 = vmul.f32 %v413_v37, %v412_v45 }
 0x44f   :  { %v309_v50 = vpop.permute.xlu2 %308 }
 0x450   :  { %v314_v51 = vsel %vm208_vm7, %v265_v49, %v309_v50  ;;  %v418_v49 = vadd.f32 %v416_v39, %v415_v48 }
 0x451   :  { %v316_v56 = vsel %vm119_vm1, %v314_v51, 0.0 }
 0x46f   :  { %v311_v54 = vpop.permute.xlu0 %310 }
 0x470   :  { %v315_v55 = vsel %vm208_vm7, %v268_v52, %v311_v54  ;;  %v459_v54 = vstv %s33_s2 }
 0x471   :  { %v317_v57 = vsel %vm119_vm1, %v315_v55, 0.0 }
 0x472   :  { %v318_v58 = vadd.f32 %v317_v57, %v316_v56 }
 0x474   :  { %v319_v59 = vrot.slane %v318_v58, 4 }
 0x476   :  { %v320_v60 = vadd.f32 %v319_v59, %v318_v58 }
 0x478   :  { %v321_v61 = vrot.slane %v320_v60, 2 }
 0x47a   :  { %v322_v62 = vadd.f32 %v321_v61, %v320_v60 }
 0x47c   :  { %v323_v63 = vrot.slane %v322_v62, 1 }
 0x47e   :  { %v324_v0 = vadd.f32 %v323_v63, %v322_v62 }
 0x480   :  { %v332_v1 = vmul.f32 %v727_v18, %v324_v0 }
 0x482   :  { %v333_v2 = vsub.f32 %v314_v51, %v332_v1  ;;  %v334_v3 = vsub.f32 %v315_v55, %v332_v1 }
 0x484   :  { %v335_v4 = vmul.f32 %v333_v2, %v333_v2  ;;  %v336_v5 = vmul.f32 %v334_v3, %v334_v3 }
 0x486   :  { %v337_v6 = vsel %vm119_vm1, %v335_v4, 0.0  ;;  %v338_v7 = vsel %vm119_vm1, %v336_v5, 0.0 }
 0x487   :  { %v339_v8 = vadd.f32 %v338_v7, %v337_v6 }
 0x489   :  { %v340_v9 = vrot.slane %v339_v8, 4 }
 0x48b   :  { %v341_v10 = vadd.f32 %v340_v9, %v339_v8 }
 0x48d   :  { %v342_v12 = vrot.slane %v341_v10, 2 }
 0x48f   :  { %v343_v13 = vadd.f32 %v342_v12, %v341_v10 }
 0x491   :  { %v344_v15 = vrot.slane %v343_v13, 1 }
 0x493   :  { %v345_v16 = vadd.f32 %v344_v15, %v343_v13 }
 0x495   :  { %v346_v17 = vmul.f32 %v345_v16, %v727_v18 }
 0x497   :  { %v347_v19 = vadd.f32 1e-05, %v346_v17 }
 0x499   :  { %588 = vrsqrt.f32 %v347_v19  ;;  %vm354_vm13 = vweird.f32 %v347_v19 }
 0x49f   :  { %v589_v23 = vpop.eup %588 }
 0x4a0   :  { %v349_v24 = vmul.f32 %v589_v23, %v347_v19  ;;  %vm355_vm12 = vweird.f32 %v589_v23 }
 0x4a1   :  { %vm356_vm14 = vmor %vm354_vm13, %vm355_vm12 }
 0x4a2   :  { %v350_v18 = vmul.f32 %v589_v23, %v349_v24  ;;  %v505_v24 = vstv %s569_s11 }
 0x4a4   :  { %v351_v25 = vmul.f32 0.5, %v350_v18 }
 0x4a6   :  { %v352_v26 = vsub.f32 1.5, %v351_v25 }
 0x4a8   :  { %v353_v27 = vmul.f32 %v589_v23, %v352_v26 }
 0x4aa   :  { %v357_v29 = vsel %vm356_vm14, %v589_v23, %v353_v27 }
 0x4ab   :  { %v358_v30 = vmul.f32 %v357_v29, %v333_v2  ;;  %v359_v33 = vmul.f32 %v357_v29, %v334_v3 }
 0x4ad   :  { %v361_v32 = vmul.f32 %v360_v28, %v358_v30  ;;  %v362_v11 = vmul.f32 %v360_v28, %v359_v33 }
 0x4af   :  { %v364_v34 = vadd.f32 %v363_v31, %v361_v32  ;;  %v365_v35 = vadd.f32 %v363_v31, %v362_v11 }
 0x4b1   :  { %421 = vrot.lane.b32.xlu2 %v364_v34, %s617_s8 }
 0x4b9   :  { %423 = vrot.lane.b32.xlu2 %v365_v35, %s617_s8 }
 0x50b   :  { %v422_v46 = vpop.permute.xlu2 %421 }
 0x50c   :  { %v427_v47 = vsel %vm119_vm1, %v417_v42, %v422_v46  ;;  %v518_v42 = vld [vmem:[%s801_s4] sm:$0xff] }
 0x50d   :  { %562 = vmatmul.msk.f32.vlgmr.msrb.gmra.mxu2 %vm238_vm6, %v427_v47 }
 0x513   :  { %v424_v50 = vpop.permute.xlu2 %423 }
 0x514   :  { %v428_v51 = vsel %vm119_vm1, %v418_v49, %v424_v50 }
 0x515   :  { %563 = vmatmul.msk.f32.gmra.mxu2 %vm238_vm6, %v428_v51 }
 0x590   :  { %v453_v52 = vpop.f32.mrf.mxu2 }
 0x591   :  { %v454_v55 = vadd.f32 %v453_v52, %v429_v43 }
 0x593   :  { %v460_v56 = vsub.f32 %v454_v55, %v459_v54  ;;  %v478_v44 = vsub.f32 0.0, %v454_v55 }
 0x595   :  { %v464_v57 = vmul.f32 1.442695, %v460_v56  ;;  %v480_v58 = vsub.f32 %v478_v44, %v459_v54  ;;  %v462_v7 = vmax.f32 %v460_v56, 0.0 }
 0x597   :  { %590 = vpow2.f32 %v464_v57  ;;  %v484_v59 = vmul.f32 1.442695, %v480_v58  ;;  %v482_v12 = vmax.f32 %v480_v58, 0.0 }
 0x598   :  { %v456_v60 = vpop.f32.mrf.mxu2 }
 0x599   :  { %592 = vpow2.f32 %v484_v59  ;;  %v457_v61 = vadd.f32 %v456_v60, %v429_v43 }
 0x59b   :  { %v461_v62 = vsub.f32 %v457_v61, %v459_v54  ;;  %v479_v63 = vsub.f32 0.0, %v457_v61 }
 0x59d   :  { %v591_v0 = vpop.eup %590  ;;  %v466_v1 = vmul.f32 1.442695, %v461_v62  ;;  %v481_v2 = vsub.f32 %v479_v63, %v459_v54  ;;  %v463_v18 = vmax.f32 %v461_v62, 0.0 }
 0x59e   :  { %v564_v3 = vadd.f32 -1.0, %v591_v0 }
 0x59f   :  { %v593_v4 = vpop.eup %592  ;;  %594 = vpow2.f32 %v466_v1  ;;  %v486_v53 = vmul.f32 1.442695, %v481_v2  ;;  %v483_v29 = vmax.f32 %v481_v2, 0.0 }
 0x5a0   :  { %v470_v5 = vmul.f32 1.6732632, %v564_v3  ;;  %v566_v6 = vadd.f32 -1.0, %v593_v4 }
 0x5a1   :  { %596 = vpow2.f32 %v486_v53 }
 0x5a2   :  { %v472_v8 = vmin.f32 %v470_v5, 0.0  ;;  %v490_v9 = vmul.f32 1.6732632, %v566_v6 }
 0x5a4   :  { %v474_v10 = vadd.f32 %v472_v8, %v462_v7  ;;  %v492_v13 = vmin.f32 %v490_v9, 0.0 }
 0x5a5   :  { %v595_v15 = vpop.eup %594 }
 0x5a6   :  { %v565_v16 = vadd.f32 -1.0, %v595_v15  ;;  %v494_v17 = vadd.f32 %v492_v13, %v482_v12  ;;  %v476_v20 = vmul.f32 1.050701, %v474_v10 }
 0x5a7   :  { %v597_v19 = vpop.eup %596 }
 0x5a8   :  { %v471_v21 = vmul.f32 1.6732632, %v565_v16  ;;  %v567_v22 = vadd.f32 -1.0, %v597_v19  ;;  %v496_v23 = vmul.f32 1.050701, %v494_v17 }
 0x5aa   :  { %v473_v25 = vmin.f32 %v471_v21, 0.0  ;;  %v491_v26 = vmul.f32 1.6732632, %v567_v22  ;;  %v498_v27 = vsub.f32 %v476_v20, %v496_v23 }
 0x5ac   :  { %v475_v28 = vadd.f32 %v473_v25, %v463_v18  ;;  %v493_v30 = vmin.f32 %v491_v26, 0.0  ;;  %v506_v31 = vmul.f32 %v505_v24, %v498_v27  ;;  %v502_v36 = vmul.f32 %v501_v14, %v498_v27 }
 0x5ae   :  { %510 = vrot.lane.b32.xlu2 %v506_v31, %s618_s12  ;;  %v495_v32 = vadd.f32 %v493_v30, %v483_v29  ;;  %v477_v33 = vmul.f32 1.050701, %v475_v28 }
 0x5b0   :  { %v497_v34 = vmul.f32 1.050701, %v495_v32 }
 0x5b2   :  { %v499_v11 = vsub.f32 %v477_v33, %v497_v34 }
 0x5b4   :  { %v507_v35 = vmul.f32 %v505_v24, %v499_v11  ;;  %v503_v39 = vmul.f32 %v501_v14, %v499_v11 }
 0x5b6   :  { %512 = vrot.lane.b32.xlu1 %v507_v35, %s618_s12 }
 0x608   :  { %v511_v37 = vpop.permute.xlu2 %510 }
 0x609   :  { %v516_v38 = vadd.f32 %v511_v37, %v502_v36 }
 0x60b   :  { %542 = vst.msk [vmem:[%s802_s5] sm:$0xff] %vm208_vm7, %v516_v38 }
 0x628   :  { %v513_v40 = vpop.permute.xlu1 %512 }
 0x629   :  { %v517_v41 = vadd.f32 %v513_v40, %v503_v39 }
 0x62b   :  { %543 = vst.msk [vmem:[%s802_s5 + $0x8] sm:$0xff] %vm208_vm7, %v517_v41  ;;  %536 = vmatpush.msrb.mxu0 %v517_v41 }
 0x62d   :  { %537 = vmatpush.msrb.mxu0 %v516_v38 }
 0x62e   :  { %570 = vmatmul.msk.f32.vlgmr.msrb.gmra.mxu0 %vm119_vm1, %v518_v42 }
 0x6ab   :  { %v539_v45 = vpop.f32.mrf.mxu0 }
 0x6ac   :  { %544 = vst.msk [vmem:[%s802_s5 + $0x10] sm:$0xff] %vm208_vm7, %v539_v45 }
 0x6ad   :  { %549 = vsyncpa [#allocation3], 1 }

</bundles_post_ra>
